<compile_context>
chip_gen: v7x
topology: tpu7x:2x2x1
jax: 0.10.0
libtpu: 0.0.40
codegen_flags: <defaults>
</compile_context>

<pallas_src>
import jax
import jax.numpy as jnp
from jax import lax
from jax.experimental import pallas as pl
from jax.experimental.pallas import tpu as pltpu


def get_padding(kernel_size, padding):
    # mirrors getPadding(kernel_size, 'same') for odd kernels, stride=1
    if padding == "same":
        assert kernel_size % 2 == 1, "'same' padding here assumes odd kernel, stride=1"
        return kernel_size // 2
    return padding


def build_banded_weight(w_hwio, W, Wp):
    """Fold conv weights into K banded matrices M[kh] of shape (Wp*Cin, W*Cout).

    For a lane-packed padded row x_row = x_pad[h+kh].reshape(Wp*Cin),
        sum_kh  x_row @ M[kh]  ==  conv output row h, lane-packed as (W*Cout,).
    M[kh, w'*Cin+ci, w*Cout+co] = w[kh, w'-w, ci, co] if 0 <= w'-w < K else 0.
    """
    K, _, Cin, Cout = w_hwio.shape
    wp_idx = jnp.arange(Wp)[:, None]                      # (Wp, 1)
    w_idx = jnp.arange(W)[None, :]                        # (1, W)
    kw = wp_idx - w_idx                                   # (Wp, W)
    valid = (kw >= 0) & (kw < K)
    kw_c = jnp.clip(kw, 0, K - 1)
    blocks = w_hwio[:, kw_c]                              # (K, Wp, W, Cin, Cout)
    blocks = jnp.where(valid[None, :, :, None, None], blocks, 0.0)
    return blocks.transpose(0, 1, 3, 2, 4).reshape(K, Wp * Cin, W * Cout)


def make_conv_bn_relu_kernel(H, K):
    def kernel(x_ref, m_ref, scale_ref, bias_ref, o_ref):
        # x_ref:     (1, Hp, Wp*Cin)      lane-packed padded image (bf16)
        # m_ref:     (K, Wp*Cin, W*Cout)  banded conv weights       (bf16)
        # scale_ref: (1, W*Cout)          folded BN scale, tiled over w (f32)
        # bias_ref:  (1, W*Cout)          folded BN bias,  tiled over w (f32)
        # o_ref:     (1, H, W*Cout)       lane-dense output         (f32)
        acc = jnp.zeros(o_ref.shape[1:], dtype=jnp.float32)   # (H, W*Cout)
        # K is small & static; for much larger shapes move the accumulator into a
        # VMEM scratch and tile H / Cout instead of carrying a live jnp value.
        for kh in range(K):
            acc = acc + jnp.dot(x_ref[0, kh:kh + H, :], m_ref[kh],
                                preferred_element_type=jnp.float32)
        y = acc * scale_ref[...] + bias_ref[...]     # eval-mode BN, f32 epilogue
        y = jnp.maximum(y, 0.0)                      # activation = ReLU
        o_ref[0] = y.astype(o_ref.dtype)             # unmasked 128-lane stores

    return kernel


def conv2d_bn_relu(x_nchw, w_oihw, gamma, beta, running_mean, running_var,
                   *, eps=1e-5):
    """Forward of Conv2D_BN (stride=1, groups=1, dilation=1, bias=False,
    padding='same', activation=ReLU, BatchNorm2d in eval mode)."""
    N, Cin, H, W = x_nchw.shape
    Cout, _, K, _ = w_oihw.shape
    p = get_padding(K, "same")
    Hp, Wp = H + 2 * p, W + 2 * p
    WCout = W * Cout

    # --- glue: layout conversion, padding, channel lane-packing, weight folding ---
    x_nhwc = jnp.transpose(x_nchw, (0, 2, 3, 1))                  # NHWC
    x_pad = jnp.pad(x_nhwc, ((0, 0), (p, p), (p, p), (0, 0)))
    # TODO(synk): for large H/W/Cin, drop this full-array pad and tile over H rows
    # with in-kernel halo handling instead of materializing a padded copy in HBM.
    x_packed = x_pad.reshape(N, Hp, Wp * Cin).astype(jnp.bfloat16)

    w_hwio = jnp.transpose(w_oihw, (2, 3, 1, 0))                  # HWIO
    m_banded = build_banded_weight(w_hwio, W, Wp).astype(jnp.bfloat16)

    scale = gamma / jnp.sqrt(running_var + eps)                   # (Cout,)
    bias = beta - running_mean * scale                            # (Cout,)
    scale_l = jnp.tile(scale, W).reshape(1, WCout).astype(jnp.float32)
    bias_l = jnp.tile(bias, W).reshape(1, WCout).astype(jnp.float32)
    # TODO(synk): PyTorch BatchNorm2d in training mode uses batch statistics;
    # this kernel implements eval-mode BN folded to per-channel scale/bias.

    out_packed = pl.pallas_call(
        make_conv_bn_relu_kernel(H, K),
        out_shape=jax.ShapeDtypeStruct((N, H, WCout), jnp.float32),
        grid_spec=pltpu.PrefetchScalarGridSpec(
            num_scalar_prefetch=0,
            grid=(N,),
            in_specs=[
                pl.BlockSpec((1, Hp, Wp * Cin), lambda n: (n, 0, 0)),
                pl.BlockSpec((K, Wp * Cin, WCout), lambda n: (0, 0, 0)),
                pl.BlockSpec((1, WCout), lambda n: (0, 0)),
                pl.BlockSpec((1, WCout), lambda n: (0, 0)),
            ],
            out_specs=pl.BlockSpec((1, H, WCout), lambda n: (n, 0, 0)),
        ),
        compiler_params=pltpu.CompilerParams(
            dimension_semantics=("parallel",)),
    )(x_packed, m_banded, scale_l, bias_l)

    out_nhwc = out_packed.reshape(N, H, W, Cout)
    return jnp.transpose(out_nhwc, (0, 3, 1, 2))                  # back to NCHW


def reference(x_nchw, w_oihw, gamma, beta, running_mean, running_var, eps=1e-5):
    """Pure-JAX (f32) reference for correctness checking."""
    K = w_oihw.shape[2]
    p = get_padding(K, "same")
    y = lax.conv_general_dilated(
        x_nchw, w_oihw,
        window_strides=(1, 1),
        padding=((p, p), (p, p)),
        dimension_numbers=("NCHW", "OIHW", "NCHW"))
    scale = (gamma / jnp.sqrt(running_var + eps)).reshape(1, -1, 1, 1)
    bias = (beta - running_mean * gamma / jnp.sqrt(running_var + eps)
            ).reshape(1, -1, 1, 1)
    return jnp.maximum(y * scale + bias, 0.0)


if __name__ == "__main__":
    # Module config: Conv2D_BN(inplanes=4, activation=ReLU, planes=8,
    #                          kernel_size=3, stride=1, padding='same')
    N, Cin, H, W = 2, 4, 16, 16
    Cout, K = 8, 3

    key = jax.random.PRNGKey(0)
    kx, kw, kg, kb, km, kv = jax.random.split(key, 6)

    x = jax.random.normal(kx, (N, Cin, H, W), dtype=jnp.float32)
    # Deterministic synthetic parameters (no checkpoint load).
    w = jax.random.normal(kw, (Cout, Cin, K, K), dtype=jnp.float32) * 0.1
    gamma = 1.0 + 0.1 * jax.random.normal(kg, (Cout,), dtype=jnp.float32)
    beta = 0.1 * jax.random.normal(kb, (Cout,), dtype=jnp.float32)
    running_mean = 0.1 * jax.random.normal(km, (Cout,), dtype=jnp.float32)
    running_var = jnp.abs(jax.random.normal(kv, (Cout,), dtype=jnp.float32)) + 0.5

    out = conv2d_bn_relu(x, w, gamma, beta, running_mean, running_var)
    out = jax.block_until_ready(out)

    ref = reference(x, w, gamma, beta, running_mean, running_var)
    assert out.shape == (N, Cout, H, W)
    # bf16 MXU operands (f32 accumulation) => small drift vs the pure-f32 reference.
    assert jnp.allclose(out, ref, atol=5e-2, rtol=5e-2), "mismatch vs reference"

    print("KERNEL_OK")
</pallas_src>

<mosaic_0001>
module attributes {stable_mosaic.version = 11 : i64} {
  func.func @kernel(%arg0: i32, %arg1: memref<1x18x72xbf16, #tpu.memory_space<vmem>>, %arg2: memref<3x72x128xbf16, #tpu.memory_space<vmem>>, %arg3: memref<1x128xf32, #tpu.memory_space<vmem>>, %arg4: memref<1x128xf32, #tpu.memory_space<vmem>>, %arg5: memref<1x16x128xf32, #tpu.memory_space<vmem>>) attributes {dimension_semantics = [#tpu.dimension_semantics<parallel>], iteration_bounds = array<i64: 2>, scalar_prefetch = 0 : i64, scratch_operands = 0 : i64, tpu.core_type = #tpu.core_type<tc>, window_params = [{transform_indices = @transform_0, window_bounds = array<i64: 1, 18, 72>}, {pipeline_mode = #tpu.pipeline_mode<synchronous>, transform_indices = @transform_1, window_bounds = array<i64: 3, 72, 128>}, {pipeline_mode = #tpu.pipeline_mode<synchronous>, transform_indices = @transform_2, window_bounds = array<i64: 1, 128>}, {pipeline_mode = #tpu.pipeline_mode<synchronous>, transform_indices = @transform_3, window_bounds = array<i64: 1, 128>}, {transform_indices = @transform_4, window_bounds = array<i64: 1, 16, 128>}]} {
    %cst = arith.constant 0.000000e+00 : f32
    %0 = vector.broadcast %cst : f32 to vector<16x128xf32>
    %c0 = arith.constant 0 : index
    %c0_0 = arith.constant 0 : index
    %c0_1 = arith.constant 0 : index
    %1 = vector.load %arg1[%c0, %c0_0, %c0_1] : memref<1x18x72xbf16, #tpu.memory_space<vmem>>, vector<1x16x72xbf16>
    %2 = vector.shape_cast %1 : vector<1x16x72xbf16> to vector<16x72xbf16>
    %c0_2 = arith.constant 0 : index
    %c0_3 = arith.constant 0 : index
    %c0_4 = arith.constant 0 : index
    %3 = vector.load %arg2[%c0_2, %c0_3, %c0_4] : memref<3x72x128xbf16, #tpu.memory_space<vmem>>, vector<1x72x128xbf16>
    %4 = vector.shape_cast %3 : vector<1x72x128xbf16> to vector<72x128xbf16>
    %cst_5 = arith.constant dense<0.000000e+00> : vector<16x128xf32>
    %5 = tpu.matmul %2, %4, %cst_5 {dimension_numbers = #tpu.dot_dimension_numbers<[1], [0], [0], [1], [0, 0, 1, 1], [], []>} : vector<16x72xbf16>, vector<72x128xbf16>, vector<16x128xf32> -> vector<16x128xf32>
    %6 = arith.addf %0, %5 : vector<16x128xf32>
    %c0_6 = arith.constant 0 : index
    %c1 = arith.constant 1 : index
    %c0_7 = arith.constant 0 : index
    %7 = vector.load %arg1[%c0_6, %c1, %c0_7] : memref<1x18x72xbf16, #tpu.memory_space<vmem>>, vector<1x16x72xbf16>
    %8 = vector.shape_cast %7 : vector<1x16x72xbf16> to vector<16x72xbf16>
    %c1_8 = arith.constant 1 : index
    %c0_9 = arith.constant 0 : index
    %c0_10 = arith.constant 0 : index
    %9 = vector.load %arg2[%c1_8, %c0_9, %c0_10] : memref<3x72x128xbf16, #tpu.memory_space<vmem>>, vector<1x72x128xbf16>
    %10 = vector.shape_cast %9 : vector<1x72x128xbf16> to vector<72x128xbf16>
    %cst_11 = arith.constant dense<0.000000e+00> : vector<16x128xf32>
    %11 = tpu.matmul %8, %10, %cst_11 {dimension_numbers = #tpu.dot_dimension_numbers<[1], [0], [0], [1], [0, 0, 1, 1], [], []>} : vector<16x72xbf16>, vector<72x128xbf16>, vector<16x128xf32> -> vector<16x128xf32>
    %12 = arith.addf %6, %11 : vector<16x128xf32>
    %c0_12 = arith.constant 0 : index
    %c2 = arith.constant 2 : index
    %c0_13 = arith.constant 0 : index
    %13 = vector.load %arg1[%c0_12, %c2, %c0_13] : memref<1x18x72xbf16, #tpu.memory_space<vmem>>, vector<1x16x72xbf16>
    %14 = vector.shape_cast %13 : vector<1x16x72xbf16> to vector<16x72xbf16>
    %c2_14 = arith.constant 2 : index
    %c0_15 = arith.constant 0 : index
    %c0_16 = arith.constant 0 : index
    %15 = vector.load %arg2[%c2_14, %c0_15, %c0_16] : memref<3x72x128xbf16, #tpu.memory_space<vmem>>, vector<1x72x128xbf16>
    %16 = vector.shape_cast %15 : vector<1x72x128xbf16> to vector<72x128xbf16>
    %cst_17 = arith.constant dense<0.000000e+00> : vector<16x128xf32>
    %17 = tpu.matmul %14, %16, %cst_17 {dimension_numbers = #tpu.dot_dimension_numbers<[1], [0], [0], [1], [0, 0, 1, 1], [], []>} : vector<16x72xbf16>, vector<72x128xbf16>, vector<16x128xf32> -> vector<16x128xf32>
    %18 = arith.addf %12, %17 : vector<16x128xf32>
    %c0_18 = arith.constant 0 : index
    %c0_19 = arith.constant 0 : index
    %19 = vector.load %arg3[%c0_18, %c0_19] : memref<1x128xf32, #tpu.memory_space<vmem>>, vector<1x128xf32>
    %20 = vector.broadcast %19 : vector<1x128xf32> to vector<16x128xf32>
    %21 = arith.mulf %18, %20 : vector<16x128xf32>
    %c0_20 = arith.constant 0 : index
    %c0_21 = arith.constant 0 : index
    %22 = vector.load %arg4[%c0_20, %c0_21] : memref<1x128xf32, #tpu.memory_space<vmem>>, vector<1x128xf32>
    %23 = vector.broadcast %22 : vector<1x128xf32> to vector<16x128xf32>
    %24 = arith.addf %21, %23 : vector<16x128xf32>
    %cst_22 = arith.constant 0.000000e+00 : f32
    %25 = vector.broadcast %cst_22 : f32 to vector<16x128xf32>
    %26 = arith.maximumf %24, %25 : vector<16x128xf32>
    %c0_23 = arith.constant 0 : index
    %c0_24 = arith.constant 0 : index
    %c0_25 = arith.constant 0 : index
    %27 = vector.load %arg5[%c0_23, %c0_24, %c0_25] : memref<1x16x128xf32, #tpu.memory_space<vmem>>, vector<1x16x128xf32>
    %28 = vector.shape_cast %27 : vector<1x16x128xf32> to vector<16x128xf32>
    %29 = vector.shape_cast %26 : vector<16x128xf32> to vector<1x16x128xf32>
    tpu.vector_store %arg5[%c0_23, %c0_24, %c0_25], %29 {strides = array<i32>} : memref<1x16x128xf32, #tpu.memory_space<vmem>>, vector<1x16x128xf32>,
    return
  }
  func.func @transform_0(%arg0: i32) -> (i32, i32, i32) {
    %c0_i32 = arith.constant 0 : i32
    %c0_i32_0 = arith.constant 0 : i32
    %c0_i32_1 = arith.constant 0 : i32
    return %arg0, %c0_i32, %c0_i32_0 : i32, i32, i32
  }
  func.func @transform_1(%arg0: i32) -> (i32, i32, i32) {
    %c0_i32 = arith.constant 0 : i32
    %c0_i32_0 = arith.constant 0 : i32
    %c0_i32_1 = arith.constant 0 : i32
    %c0_i32_2 = arith.constant 0 : i32
    return %c0_i32, %c0_i32_0, %c0_i32_1 : i32, i32, i32
  }
  func.func @transform_2(%arg0: i32) -> (i32, i32) {
    %c0_i32 = arith.constant 0 : i32
    %c0_i32_0 = arith.constant 0 : i32
    %c0_i32_1 = arith.constant 0 : i32
    return %c0_i32, %c0_i32_0 : i32, i32
  }
  func.func @transform_3(%arg0: i32) -> (i32, i32) {
    %c0_i32 = arith.constant 0 : i32
    %c0_i32_0 = arith.constant 0 : i32
    %c0_i32_1 = arith.constant 0 : i32
    return %c0_i32, %c0_i32_0 : i32, i32
  }
  func.func @transform_4(%arg0: i32) -> (i32, i32, i32) {
    %c0_i32 = arith.constant 0 : i32
    %c0_i32_0 = arith.constant 0 : i32
    %c0_i32_1 = arith.constant 0 : i32
    return %arg0, %c0_i32, %c0_i32_0 : i32, i32, i32
  }
}

</mosaic_0001>

<bundles_post_ra>
// kernel: tpu_custom_call.1
= control target key start
LH: loop header
LB: loop body
LE: loop exit
PB: predicated region body
PF: predicated region fallthrough
CT: control target
= control target key end

     0   :  { %9 = vsyncpa [#allocation3], 0  ;;  %s1092_s0 = inlined_call_operand.vmem [shape: bf16[2,18,72], index: 0, kind: input, shape index: {}]   ;;  %s1093_s1 = inlined_call_operand.hbm [shape: bf16[3,72,128], index: 1, kind: input, shape index: {}]   ;;  %s1094_s2 = inlined_call_operand.vmem [shape: f32[1,128], index: 2, kind: input, shape index: {}]   ;;  %s1095_s3 = inlined_call_operand.vmem [shape: f32[1,128], index: 3, kind: input, shape index: {}]   ;;  %s1096_s4 = inlined_call_operand.hbm [shape: f32[2,16,128], index: 4, kind: output, shape index: {}]  }
   0x1   :  { %10 = vsyncpa [#allocation4], 0 }
   0x2   :  { %12 = vsyncpa [#allocation4 + $0x1], 0  ;;  %s915_s15 = smov 0   ;;  %s917_s16 = smov 0  }
   0x3   :  { %s919_s17 = smov 0   ;;  %s921_s18 = smov 0  }
   0x4 LB: > { %s936_s19 = sadd.s32 4294967295, %s880_s18   ;;  %s608_s20 = sadd.s32 4294967294, %s880_s18   ;;  %s880_s18 = sphi %s921_s18, %s1112_s18   ;;  %s876_s17 = sphi %s919_s17, %s1111_s17   ;;  %s872_s16 = sphi %s917_s16, %s1110_s16   ;;  %s868_s15 = sphi %s915_s15, %s1109_s15  }
   0x5   : > { %s940_s21 = sadd.s32 1, %s880_s18   ;;  %s114_s22 = sadd.s32 1, %s876_s17 }
   0x6   : > { %s111_s23 = ssub.s32 %s880_s18, %s940_s21  ;;  %p124_p0 = scmp.ne.s32.totalorder %s876_s17, %s872_s16 }
   0x7   : > { %p112_p1 = scmp.eq.s32.totalorder %s111_s23, 0  ;;  %p125_p2 = scmp.eq.s32.totalorder %s936_s19, 1 }
   0x8   : > { %p130_p3 = scmp.ne.s32.totalorder %s872_s16, %s868_s15  ;;  %p131_p4 = scmp.eq.s32.totalorder %s608_s20, 1 }
   0x9   : > { %s951_s24 = scalar_select %p112_p1, %s876_s17, %s114_s22  }
   0xa   : > { %p953_p5 = por %p125_p2, %p124_p0  ;;  %p957_p6 = por %p131_p4, %p130_p3 }
   0xb   : > { %p609_p7 = scmp.ge.s32.totalorder %s880_s18, 1  ;;  %p138_p8 = scmp.lt.s32.totalorder %s880_s18, 3 }
   0xc   : > { %s1100_s25 = scalar_select %p953_p5, 1, 0 }
   0xd   : > { %s1101_s26 = scalar_select %p957_p6, 1, 0 }
   0xe   : > { %p1097_p9 = scmp.eq.s32.totalorder %s936_s19, 0  ;;  %p964_p10 = pnand %p609_p7, %p138_p8 }
   0xf   : > { %s882_s28 = smov [#allocation2]   ;;  %s786_s7 = scalar_lea.hbm %s1093_s1, 1728 }
  0x10   : > { %s1102_s27 = scalar_select %p964_p10, 1, 0 }
  0x11   : > { %s150_s29 = sshll.u32 %s882_s28, 4  ;;  %p718_p11 = pneg %p964_p10  ;;  %s151_s29 = int_to_ptr.vmem [resolvable:$true] %s150_s29 }
  0x12   : > { %p787_p13 = scmp.ne.s32.totalorder %s1093_s1, %s786_s7  ;;  %p793_p3 = scmp.lt.u32.totalorder %s786_s7, %s1093_s1 }
  0x13   : > { %p972_p12 = pnand %p1097_p9, %p718_p11 }
  0x15   : > { %p788_p0 = pneg %p972_p12 }
  0x17   : > { %p789_p1 = pnand %p788_p0, %p787_p13 }
  0x19   : > { %p790_p2 = pneg %p789_p1 }
  0x1b   : > { %p795_p4 = pnand %p793_p3, %p790_p2 }
  0x1d   : > { %798 = shalt.err (!%p795_p4)
}
  0x1e   : > { %s799_s12 = scalar_lea.vmem %s151_s29, 1728  ;;  %p807_p9 = scmp.lt.s32.totalorder %s151_s29, %s151_s29 }
  0x1f   : > { %p800_p7 = scmp.ne.s32.totalorder %s151_s29, %s799_s12  ;;  %p808_p6 = scmp.lt.s32.totalorder %s799_s12, %s799_s12 }
  0x21   : > { %p802_p8 = pnand %p800_p7, %p788_p0  ;;  %p809_p5 = por %p808_p6, %p807_p9 }
  0x23   : > { %p803_p11 = pneg %p802_p8 }
  0x25   : > { %p810_p10 = pnand %p809_p5, %p803_p11 }
  0x27   : > { %813 = shalt.err (!%p810_p10)
}
  0x28   : > { %s883_s13 = smov 64   ;;  %s884_s14 = smov 4  }
  0x29   : > { %721 = dma.hbm_to_vmem [thread:$0]  (!%p972_p12), %s1093_s1, 1728, %s151_s29, [#allocation3], %s883_s13, %s883_s13, %s884_s14  }
  0x2a   : > { %p1104_p13 = scmp.ne.s32.totalorder %s1102_s27, 0 }
  0x2b   : > { %p1105_p1 = scmp.eq.s32.totalorder (!%p1104_p13), %s936_s19, 0 }
  0x2c   : > { %180 = sbr.rel (%p1104_p13) target bundleno = 331 (0x14b), region = 36 }
  0x33   : > { %859 = dma.done.wait (%p1105_p1), [#allocation3], 1728   ;;  %p1106_p0 = pmov %p1105_p1 }
  0x34   : > { %p206_p5 = scmp.lt.s32.totalorder %s936_s19, 1  ;;  %v885_v0 = vmov 0.0   ;;  %vm886_vm0 = vmmov 0   ;;  %v768_v1 = vld [vmem:[#allocation2] sm:$0xff]   ;;  %v769_v2 = vld [vmem:[#allocation2 + $0x8] sm:$0xff]   ;;  %v770_v4 = vld [vmem:[#allocation2 + $0x10] sm:$0xff]  }
  0x35   : > { %861 = vsyncadd (%p1106_p0), [#allocation3], 4294965568  ;;  %677 = vmatprep.subr.bf16.mxu0 %v885_v0  ;;  %663 = vmatprep.subr.bf16.mxu1 %v885_v0  ;;  %v773_v3 = vld [vmem:[#allocation2 + $0x24] sm:$0xff]   ;;  %v777_v7 = vld [vmem:[#allocation2 + $0x2c] sm:$0xff]   ;;  %vm286_vm1 = vcmask 1043456   ;;  %vm282_vm2 = vcmask 588800  }
  0x36   : > { %687 = vmatprep.mubr.msk.bf16.mxu0 %vm886_vm0, %v885_v0  ;;  %s207_s23 = scalar_select %p206_p5, %s936_s19, 1  ;;  %673 = vmatprep.mubr.msk.bf16.mxu1 %vm886_vm0, %v885_v0  ;;  %v771_v8 = vld [vmem:[#allocation2 + $0x18] sm:$0xff]   ;;  %v772_v10 = vld [vmem:[#allocation2 + $0x20] ss:$0 sps:$4 sm:$0xff]   ;;  %v783_v18 = vld [vmem:[#allocation2 + $0x44] ss:$0 sps:$4 sm:$0xff]  }
  0x37   : > { %678 = vmatpush3.bf16.msra.mxu0 %v768_v1  ;;  %664 = vmatpush3.bf16.msra.mxu1 %v773_v3  ;;  %v779_v11 = vld [vmem:[#allocation2 + $0x34] sm:$0xff]   ;;  %v361_v13 = vsel %vm286_vm1, %v772_v10, 0  ;;  %v781_v14 = vld [vmem:[#allocation2 + $0x3c] sm:$0xff]   ;;  %v776_v20 = vld [vmem:[#allocation2 + $0x48] sm:$0xff]   ;;  %v288_v23 = vsel %vm286_vm1, %v783_v18, 0  ;;  %vm418_vm4 = vcmask 1046528  }
  0x38   : > { %s711_s27 = smul.u32 12, %s207_s23  ;;  %679 = vmatprep.subr.bf16.mxu0 %v885_v0  ;;  %665 = vmatprep.subr.bf16.mxu1 %v885_v0  ;;  %vm242_vm3 = vsmask.f32 7424  ;;  %v778_v24 = vld [vmem:[#allocation2 + $0x50] sm:$0xff]   ;;  %v780_v26 = vld [vmem:[#allocation2 + $0x58] sm:$0xff]   ;;  %v782_v29 = vld [vmem:[#allocation2 + $0x60] sm:$0xff]  }
  0x39   : > { %v785_v30 = vld [vmem:[#allocation2 + $0x68] ss:$0 sps:$4 sm:$0xff]   ;;  %s203_s5 = sand.u32 1, %s872_s16   ;;  %s644_s13 = sshll.u32 %s936_s19, 8 }
  0x3a   : > { %s1010_s30 = scalar_lea.vmem %s1092_s0, %s711_s27  ;;  %v453_v33 = vsel %vm286_vm1, %v785_v30, 0  ;;  %s614_s6 = sshll.u32 %s203_s5, 4  ;;  %v637_v40 = vld [vmem:[%s1094_s2] ss:$0 sm:$0xff] }
  0x3b   : > { %680 = vmatpush3.bf16.msra.mxu0 %v769_v2  ;;  %v212_v5 = vld [vmem:[%s1010_s30] sm:$0xf]  ;;  %v213_v6 = vld [vmem:[%s1010_s30 + $0x4] sm:$0xf]  ;;  %666 = vmatpush3.bf16.msra.mxu1 %v777_v7  ;;  %s205_s11 = scalar_lea.vmem [#allocation5], %s614_s6  ;;  %s1049_s22 = scalar_lea.hbm %s1096_s4, %s644_s13 }
  0x3c   : > { %681 = vmatprep.subr.bf16.mxu0 %v885_v0  ;;  %v616_v9 = vcombine.low %v212_v5, %v213_v6  ;;  %667 = vmatprep.subr.bf16.mxu1 %v885_v0  ;;  %v784_v15 = vld [vmem:[%s1010_s30 + $0x8] ss:$0 sps:$4 sm:$0x11]   ;;  %v404_v27 = vld [vmem:[%s1010_s30] sm:$0xe]  ;;  %s534_s12 = sshll.u32 %s205_s11, 4  ;;  %s1044_s12 = int_to_ptr.vmem [resolvable:$true] %s534_s12 }
  0x3d   : > { %v251_v19 = vshll.u32 %v784_v15, 16  ;;  %v630_v28 = vcombine.low %v404_v27, %v213_v6  ;;  %v420_v32 = vrot.slane %v784_v15, 1  ;;  %v638_v43 = vld [vmem:[%s1095_s3] ss:$0 sm:$0xff]  ;;  %s1051_s23 = scalar_lea.sflag [#allocation4], %s203_s5  ;;  %s814_s27 = scalar_lea.vmem %s1044_s12, 256 }
  0x3e   : > { %v246_v12 = vshll.u32 %v616_v9, 16  ;;  %v244_v16 = vshrl.u32 %v616_v9, 16  ;;  %p815_p6 = scmp.ne.s32.totalorder %s1044_s12, %s814_s27  ;;  %p1107_p9 = scmp.ne.s32.totalorder %s1100_s25, 0 }
  0x3f   : > { %682 = vmatpush3.bf16.msra.mxu0 %v770_v4  ;;  %668 = vmatpush3.bf16.msra.mxu1 %v779_v11  ;;  %v253_v22 = vrot.slane %v251_v19, 1  ;;  %v419_v31 = vrot.slane %v630_v28, 1  ;;  %s887_s19 = smov [#allocation5]  }
  0x40   : > { %683 = vmatprep.subr.bf16.mxu0 %v885_v0  ;;  %v248_v17 = vrot.slane %v246_v12, 1  ;;  %669 = vmatprep.subr.bf16.mxu1 %v885_v0  ;;  %p816_p10 = pnand %p815_p6, %p1107_p9  ;;  %s818_s28 = sshll.u32 %s887_s19, 4  ;;  %s819_s28 = int_to_ptr.vmem [resolvable:$false] %s818_s28 }
  0x41   : > { %v421_v34 = vsel %vm418_vm4, %v419_v31, %v420_v32  ;;  %s820_s29 = scalar_lea.vmem %s819_s28, 512  ;;  %p821_p2 = scmp.lt.s32.totalorder %s1044_s12, %s819_s28 }
  0x42   : > { %v249_v21 = vor.u32 %v248_v17, %v244_v16  ;;  %p817_p12 = pneg %p816_p10  ;;  %p822_p3 = scmp.lt.s32.totalorder %s820_s29, %s814_s27 }
  0x43   : > { %684 = vmatpush3.bf16.msra.mxu0 %v771_v8  ;;  %670 = vmatpush3.bf16.msra.mxu1 %v781_v14 }
  0x44   : > { %685 = vmatprep.subr.bf16.mxu0 %v885_v0  ;;  %671 = vmatprep.subr.bf16.mxu1 %v885_v0  ;;  %v254_v25 = vsel %vm242_vm3, %v249_v21, %v253_v22  ;;  %p823_p4 = por %p822_p3, %p821_p2 }
  0x46   : > { %p824_p7 = pnand %p823_p4, %p817_p12 }
  0x47   : > { %686 = vmatpush3.bf16.msra.mxu0 %v361_v13  ;;  %672 = vmatpush3.bf16.msra.mxu1 %v288_v23 }
  0x48   : > { %691 = vmatprep.subr.bf16.mxu0 %v885_v0 }
  0x4a   : > { %688 = vmatmul.mubr.msk.bf16.vlgmr.msra.gmra.mrb[0].mxu0 %vm282_vm2, %v616_v9  ;;  %674 = vmatmul.mubr.msk.bf16.vlgmr.msra.gmra.mrb[0].mxu1 %vm282_vm2, %v254_v25 }
  0x4b   : > { %692 = vmatpush3.bf16.msra.mxu0 %v776_v20  ;;  %701 = vmatprep.mubr.msk.bf16.mxu0 %vm886_vm0, %v885_v0 }
  0x4c   : > { %693 = vmatprep.subr.bf16.mxu0 %v885_v0 }
  0x4f   : > { %694 = vmatpush3.bf16.msra.mxu0 %v778_v24 }
  0x50   : > { %695 = vmatprep.subr.bf16.mxu0 %v885_v0 }
  0x53   : > { %696 = vmatpush3.bf16.msra.mxu0 %v780_v26 }
  0x54   : > { %697 = vmatprep.subr.bf16.mxu0 %v885_v0 }
  0x57   : > { %698 = vmatpush3.bf16.msra.mxu0 %v782_v29 }
  0x58   : > { %699 = vmatprep.subr.bf16.mxu0 %v885_v0 }
  0x5b   : > { %700 = vmatpush3.bf16.msra.mxu0 %v453_v33 }
  0x5e   : > { %702 = vmatmul.mubr.msk.bf16.vlgmr.msra.gmra.mrb[0].mxu0 %vm282_vm2, %v421_v34 }
 0x11d   : > { %v324_v35 = vpop.f32.mrb[0].mxu1 }
 0x11e   : > { %v675_v36 = vpop.f32.mrb[1].mxu1 }
 0x11f   : > { %v327_v37 = vpop.f32.mrb[2].mxu1 }
 0x120   : > { %v676_v38 = vpop.f32.mrb[3].mxu1 }
 0x131   : > { %v489_v39 = vpop.f32.mrb[0].mxu0 }
 0x132   : > { %v705_v41 = vadd.f32 %v489_v39, %v324_v35  ;;  %v703_v42 = vpop.f32.mrb[1].mxu0 }
 0x133   : > { %v492_v44 = vpop.f32.mrb[2].mxu0 }
 0x134   : > { %v505_v45 = vmul.f32 %v705_v41, %v637_v40  ;;  %v706_v46 = vadd.f32 %v492_v44, %v327_v37  ;;  %v704_v47 = vpop.f32.mrb[3].mxu0 }
 0x136   : > { %v514_v48 = vadd.f32 %v638_v43, %v505_v45  ;;  %v506_v49 = vmul.f32 %v706_v46, %v637_v40 }
 0x138   : > { %v516_v50 = vmax.f32 %v514_v48, 0.0  ;;  %v515_v51 = vadd.f32 %v638_v43, %v506_v49 }
 0x13a   : > { %518 = vst [vmem:[%s205_s11] sm:$0xff] %v516_v50  ;;  %v517_v52 = vmax.f32 %v515_v51, 0.0 }
 0x13c   : > { %519 = vst [vmem:[%s205_s11 + $0x8] sm:$0xff] %v517_v52 }
 0x13d   : > { %827 = shalt.err (!%p824_p7)
}
 0x13e   : > { %s828_s30 = scalar_lea.hbm %s1049_s22, 256  ;;  %s832_s7 = scalar_lea.hbm %s1096_s4, 512 }
 0x13f   : > { %p829_p8 = scmp.ne.s32.totalorder %s1049_s22, %s828_s30  ;;  %p833_p1 = scmp.lt.u32.totalorder %s1049_s22, %s1096_s4 }
 0x140   : > { %p834_p0 = scmp.lt.u32.totalorder %s832_s7, %s828_s30  ;;  %p836_p6 = scmp.lt.u32.totalorder %s828_s30, %s1049_s22 }
 0x141   : > { %p830_p11 = pnand %p829_p8, %p1107_p9 }
 0x142   : > { %p835_p5 = por %p834_p0, %p833_p1 }
 0x143   : > { %p831_p13 = pneg %p830_p11 }
 0x144   : > { %p837_p10 = por %p836_p6, %p835_p5 }
 0x146   : > { %p838_p12 = pnand %p837_p10, %p831_p13 }
 0x148   : > { %841 = shalt.err (!%p838_p12)
}
 0x149   : > { %s888_s10 = smov 128   ;;  %s889_s11 = smov 8  }
 0x14a   : > { %716 = dma.vmem_to_hbm [thread:$0]  (%p1107_p9), %s1044_s12, 256, %s1049_s22, %s1051_s23, %s888_s10, %s888_s10, %s889_s11  }
 0x14b PF: > { %p728_p2 = scmp.ge.s32.totalorder %s880_s18, 2  ;;  %s549_s13 = sand.u32 1, %s868_s15  }
 0x14c   : > { %p1108_p3 = scmp.ne.s32.totalorder %s1101_s26, 0  ;;  %s550_s14 = scalar_lea.sflag [#allocation4], %s549_s13 }
 0x14e   : > { %p723_p4 = pnand %p728_p2, %p1108_p3 }
 0x150   : > { %863 = dma.done.wait (!%p723_p4), %s550_s14, 256  }
 0x151   : > { %865 = vsyncadd (!%p723_p4), %s550_s14, 4294967040  ;;  %p15_p7 = scmp.ge.s32.totalorder %s940_s21, 4   ;;  %s1109_s15 = smov %s872_s16 }
 0x152   : > { %s1110_s16 = smov %s876_s17  ;;  %s1111_s17 = smov %s951_s24 }
 0x153   : > { %s1112_s18 = smov %s940_s21  ;;  %17 = sbr.rel (!%p15_p7) target bundleno = 4 (0x4), region = 78 }
 0x15a   :  { %555 = vsyncpa [#allocation3], 1 }
 0x15b   :  { %557 = vsyncpa [#allocation3 + $0x1], 1 }
 0x15c   :  { %558 = vsyncpa [#allocation4], 1 }
 0x15d   :  { %560 = vsyncpa [#allocation4 + $0x1], 1 }

</bundles_post_ra>
